<compile_context>
chip_gen: v7x
topology: tpu7x:2x2x1
jax: 0.10.0
libtpu: 0.0.40
codegen_flags: <defaults>
</compile_context>

<pallas_src>
import math
from functools import partial

import jax
import jax.numpy as jnp
from jax.experimental import pallas as pl
from jax.experimental.pallas import tpu as pltpu

TOTAL_COUNT = 4


def _log_binom_coeff(k, total_count):
    """log C(n, k) for integer-valued float k in [0, n], n small & static.

    Uses symmetry m = min(k, n - k) and folds all lgamma terms into
    compile-time constants, leaving floor(n/2) selects per element
    (2 selects for n = 4: values 0, log 4, log 6).
    """
    n = total_count
    m = jnp.minimum(k, float(n) - k)
    out = jnp.zeros_like(k)
    for i in range(1, n // 2 + 1):
        c = math.lgamma(n + 1.0) - math.lgamma(i + 1.0) - math.lgamma(n - i + 1.0)
        out = jnp.where(m > (i - 0.5), jnp.float32(c), out)
    return out


def _binomial_decoder_kernel(s_ref, x_ref, wt_ref, b_ref, o_ref, *,
                             total_count, b_blk, seq):
    # s_ref : (b_blk*seq, dx)  bf16   flattened (batch, time) activation rows
    # x_ref : (b_blk*seq, dy)  bf16   observed counts (integer-valued)
    # wt_ref: (dx, dy)         bf16   pre-transposed Linear weight
    # b_ref : (1, dy)          f32    bias
    # o_ref : (1, b_blk)       f32    per-batch summed log-prob (lane-dense row)
    n = float(total_count)

    # Single fat matmul on the MXU with f32 accumulation.
    z = jnp.dot(s_ref[...], wt_ref[...], preferred_element_type=jnp.float32)
    logits = jnp.clip(z + b_ref[...], -15.0, 15.0)                  # (b_blk*seq, dy)

    # Upcast counts to f32 immediately after load (v5e VPU has no bf16).
    k = x_ref[...].astype(jnp.float32)

    # Stable softplus; logits are clipped to [-15, 15] so 1 + exp(-|x|) stays exact
    # enough in f32 (exp/log land on the EUP slot, essentially free next to the VPU ops).
    softplus = jnp.maximum(logits, 0.0) + jnp.log(1.0 + jnp.exp(-jnp.abs(logits)))
    log_comb = _log_binom_coeff(k, total_count)
    # NOTE: exact only for integer-valued counts in [0, total_count] (the model's domain).
    lp = k * logits - n * softplus + log_comb                       # (b_blk*seq, dy)

    # Per-batch reduction: split rows back into (b_blk, seq, dy) (last dim
    # unchanged -> cheap retile), reduce trailing axes (XLU), store one dense row.
    lp3 = lp.reshape(b_blk, seq, lp.shape[-1])
    per_b = jnp.sum(jnp.sum(lp3, axis=2), axis=1)                   # (b_blk,)
    o_ref[...] = per_b[None, :]


def _pick_b_blk(B, T, dx, dy):
    # Up to 128 batch rows per step (lane-dense output, fat MXU M-dim), but try
    # to keep >= 2 grid steps for v7x's two TensorCores, and keep the per-step
    # input footprint (2 inputs x 2 pipeline buffers) well under scoped VMEM.
    blk = min(128, max(16, pl.next_power_of_2(pl.cdiv(B, 2))))
    bytes_per_block = 2 * blk * T * (dx + dy)       # bf16 inputs
    while blk > 16 and 4 * bytes_per_block > 8 * 1024 * 1024:
        blk //= 2
        bytes_per_block //= 2
    return blk


def binomial_decoder_forward(samples, x, w, bias, total_count=TOTAL_COUNT, b_blk=None):
    B, T, dx = samples.shape
    dy = w.shape[0]
    assert w.shape == (dy, dx) and x.shape == (B, T, dy) and bias.shape == (dy,)

    if b_blk is None:
        b_blk = _pick_b_blk(B, T, dx, dy)
    assert (b_blk * T) % 8 == 0                      # sublane-aligned row blocks
    n_blocks = pl.cdiv(B, b_blk)
    b_pad = n_blocks * b_blk

    if b_pad != B:  # pad batch so every grid step is a full block (junk rows sliced off)
        pad = ((0, b_pad - B), (0, 0), (0, 0))
        samples = jnp.pad(samples, pad)
        x = jnp.pad(x, pad)

    # bf16 inputs halve HBM traffic (kernel is bandwidth / step-overhead bound);
    # counts 0..total_count and normal-scale activations are safely representable.
    s_flat = samples.astype(jnp.bfloat16).reshape(b_pad * T, dx)
    x_flat = x.astype(jnp.bfloat16).reshape(b_pad * T, dy)
    wt = w.T.astype(jnp.bfloat16)                    # transpose once, outside the kernel
    bias2d = bias.astype(jnp.float32).reshape(1, dy)

    cost = pl.CostEstimate(
        flops=int(2 * b_pad * T * dx * dy + 20 * b_pad * T * dy),
        transcendentals=int(2 * b_pad * T * dy),
        bytes_accessed=int(2 * b_pad * T * (dx + dy) + 2 * dx * dy + 4 * dy + 4 * b_pad),
    )

    out = pl.pallas_call(
        partial(_binomial_decoder_kernel, total_count=total_count, b_blk=b_blk, seq=T),
        out_shape=jax.ShapeDtypeStruct((n_blocks, b_blk), jnp.float32),
        grid_spec=pltpu.PrefetchScalarGridSpec(
            num_scalar_prefetch=0,
            grid=(n_blocks,),
            in_specs=[
                pl.BlockSpec((b_blk * T, dx), lambda i: (i, 0)),   # activations block
                pl.BlockSpec((b_blk * T, dy), lambda i: (i, 0)),   # counts block
                pl.BlockSpec((dx, dy), lambda i: (0, 0)),          # full weight (resident)
                pl.BlockSpec((1, dy), lambda i: (0, 0)),           # bias (resident)
            ],
            out_specs=pl.BlockSpec((1, b_blk), lambda i: (i, 0)),  # lane-dense row per step
        ),
        compiler_params=pltpu.CompilerParams(
            dimension_semantics=("parallel",),
            vmem_limit_bytes=64 * 1024 * 1024,
        ),
        cost_estimate=cost,
    )(s_flat, x_flat, wt, bias2d)
    return out.reshape(-1)[:B]


def _reference(samples, x, w, bias, total_count=TOTAL_COUNT):
    # Reference on the same bf16-quantized inputs the kernel consumes.
    s = samples.astype(jnp.bfloat16).astype(jnp.float32)
    wt = w.T.astype(jnp.bfloat16).astype(jnp.float32)
    k = x.astype(jnp.bfloat16).astype(jnp.float32)
    logits = jnp.clip(jnp.einsum("btd,do->bto", s, wt) + bias, -15.0, 15.0)
    n = float(total_count)
    softplus = jnp.maximum(logits, 0.0) + jnp.log1p(jnp.exp(-jnp.abs(logits)))
    lp = k * logits - n * softplus + _log_binom_coeff(k, total_count)
    return jnp.sum(lp, axis=(-1, -2))


if __name__ == "__main__":
    B, T, dx, dy = 2, 8, 32, 16

    key = jax.random.PRNGKey(0)
    k_s, k_x, k_w, k_b = jax.random.split(key, 4)

    samples = jax.random.normal(k_s, (B, T, dx), dtype=jnp.float32)
    # observed binomial counts in [0, total_count]
    x = jax.random.randint(k_x, (B, T, dy), 0, TOTAL_COUNT + 1).astype(jnp.float32)

    # deterministic nn.Linear-style init: U(-1/sqrt(dx), 1/sqrt(dx))
    bound = 1.0 / jnp.sqrt(float(dx))
    w = jax.random.uniform(k_w, (dy, dx), jnp.float32, -bound, bound)
    bias = jax.random.uniform(k_b, (dy,), jnp.float32, -bound, bound)

    out = jax.block_until_ready(binomial_decoder_forward(samples, x, w, bias))
    ref = _reference(samples, x, w, bias)

    assert out.shape == (B,), out.shape
    assert jnp.allclose(out, ref, rtol=2e-3, atol=1e-2), (out, ref)

    print("KERNEL_OK")
</pallas_src>

<mosaic_0001>
module attributes {stable_mosaic.version = 11 : i64} {
  func.func @_binomial_decoder_kernel(%arg0: i32, %arg1: memref<128x32xbf16, #tpu.memory_space<vmem>>, %arg2: memref<128x16xbf16, #tpu.memory_space<vmem>>, %arg3: memref<32x16xbf16, #tpu.memory_space<vmem>>, %arg4: memref<1x16xf32, #tpu.memory_space<vmem>>, %arg5: memref<1x16xf32, #tpu.memory_space<vmem>>) attributes {dimension_semantics = [#tpu.dimension_semantics<parallel>], iteration_bounds = array<i64: 1>, scalar_prefetch = 0 : i64, scratch_operands = 0 : i64, tpu.core_type = #tpu.core_type<tc>, window_params = [{transform_indices = @transform_0, window_bounds = array<i64: 128, 32>}, {transform_indices = @transform_1, window_bounds = array<i64: 128, 16>}, {pipeline_mode = #tpu.pipeline_mode<synchronous>, transform_indices = @transform_2, window_bounds = array<i64: 32, 16>}, {pipeline_mode = #tpu.pipeline_mode<synchronous>, transform_indices = @transform_3, window_bounds = array<i64: 1, 16>}, {transform_indices = @transform_4, window_bounds = array<i64: 1, 16>}]} {
    %c0 = arith.constant 0 : index
    %c0_0 = arith.constant 0 : index
    %0 = vector.load %arg1[%c0, %c0_0] : memref<128x32xbf16, #tpu.memory_space<vmem>>, vector<128x32xbf16>
    %c0_1 = arith.constant 0 : index
    %c0_2 = arith.constant 0 : index
    %1 = vector.load %arg3[%c0_1, %c0_2] : memref<32x16xbf16, #tpu.memory_space<vmem>>, vector<32x16xbf16>
    %cst = arith.constant dense<0.000000e+00> : vector<128x16xf32>
    %2 = tpu.matmul %0, %1, %cst {dimension_numbers = #tpu.dot_dimension_numbers<[1], [0], [0], [1], [0, 0, 1, 1], [], []>} : vector<128x32xbf16>, vector<32x16xbf16>, vector<128x16xf32> -> vector<128x16xf32>
    %c0_3 = arith.constant 0 : index
    %c0_4 = arith.constant 0 : index
    %3 = vector.load %arg4[%c0_3, %c0_4] : memref<1x16xf32, #tpu.memory_space<vmem>>, vector<1x16xf32>
    %4 = vector.broadcast %3 : vector<1x16xf32> to vector<128x16xf32>
    %5 = arith.addf %2, %4 : vector<128x16xf32>
    %cst_5 = arith.constant -1.500000e+01 : f32
    %cst_6 = arith.constant 1.500000e+01 : f32
    %6 = vector.broadcast %cst_5 : f32 to vector<128x16xf32>
    %7 = arith.maximumf %6, %5 : vector<128x16xf32>
    %8 = vector.broadcast %cst_6 : f32 to vector<128x16xf32>
    %9 = arith.minimumf %8, %7 : vector<128x16xf32>
    %c0_7 = arith.constant 0 : index
    %c0_8 = arith.constant 0 : index
    %10 = vector.load %arg2[%c0_7, %c0_8] : memref<128x16xbf16, #tpu.memory_space<vmem>>, vector<128x16xbf16>
    %11 = arith.extf %10 : vector<128x16xbf16> to vector<128x16xf32>
    %cst_9 = arith.constant 0.000000e+00 : f32
    %12 = vector.broadcast %cst_9 : f32 to vector<128x16xf32>
    %13 = arith.maximumf %9, %12 : vector<128x16xf32>
    %14 = math.absf %9 : vector<128x16xf32>
    %cst_10 = arith.constant 0.000000e+00 : f32
    %15 = vector.broadcast %cst_10 : f32 to vector<128x16xf32>
    %16 = arith.subf %15, %14 : vector<128x16xf32>
    %17 = math.exp %16 : vector<128x16xf32>
    %cst_11 = arith.constant 1.000000e+00 : f32
    %18 = vector.broadcast %cst_11 : f32 to vector<128x16xf32>
    %19 = arith.addf %18, %17 : vector<128x16xf32>
    %20 = math.log %19 : vector<128x16xf32>
    %21 = arith.addf %13, %20 : vector<128x16xf32>
    %cst_12 = arith.constant 4.000000e+00 : f32
    %22 = vector.broadcast %cst_12 : f32 to vector<128x16xf32>
    %23 = arith.subf %22, %11 : vector<128x16xf32>
    %24 = arith.minimumf %11, %23 : vector<128x16xf32>
    %cst_13 = arith.constant 0.000000e+00 : f32
    %25 = vector.broadcast %cst_13 : f32 to vector<128x16xf32>
    %cst_14 = arith.constant 5.000000e-01 : f32
    %26 = vector.broadcast %cst_14 : f32 to vector<128x16xf32>
    %27 = arith.cmpf ogt, %24, %26 : vector<128x16xf32>
    %cst_15 = arith.constant 1.38629436 : f32
    %28 = vector.broadcast %cst_15 : f32 to vector<128x16xf32>
    %29 = arith.select %27, %28, %25 : vector<128x16xi1>, vector<128x16xf32>
    %cst_16 = arith.constant 1.500000e+00 : f32
    %30 = vector.broadcast %cst_16 : f32 to vector<128x16xf32>
    %31 = arith.cmpf ogt, %24, %30 : vector<128x16xf32>
    %cst_17 = arith.constant 1.79175949 : f32
    %32 = vector.broadcast %cst_17 : f32 to vector<128x16xf32>
    %33 = arith.select %31, %32, %29 : vector<128x16xi1>, vector<128x16xf32>
    %34 = arith.mulf %11, %9 : vector<128x16xf32>
    %cst_18 = arith.constant 4.000000e+00 : f32
    %35 = vector.broadcast %cst_18 : f32 to vector<128x16xf32>
    %36 = arith.mulf %35, %21 : vector<128x16xf32>
    %37 = arith.subf %34, %36 : vector<128x16xf32>
    %38 = arith.addf %37, %33 : vector<128x16xf32>
    %39 = vector.shape_cast %38 : vector<128x16xf32> to vector<16x8x16xf32>
    %cst_19 = arith.constant dense<0.000000e+00> : vector<16x8xf32>
    %40 = vector.multi_reduction <add>, %39, %cst_19 [2] : vector<16x8x16xf32> to vector<16x8xf32>
    %cst_20 = arith.constant dense<0.000000e+00> : vector<16xf32>
    %41 = vector.multi_reduction <add>, %40, %cst_20 [1] : vector<16x8xf32> to vector<16xf32>
    %42 = vector.shape_cast %41 : vector<16xf32> to vector<1x16xf32>
    %c0_21 = arith.constant 0 : index
    %c0_22 = arith.constant 0 : index
    %43 = vector.load %arg5[%c0_21, %c0_22] : memref<1x16xf32, #tpu.memory_space<vmem>>, vector<1x16xf32>
    tpu.vector_store %arg5[%c0_21, %c0_22], %42 {strides = array<i32>} : memref<1x16xf32, #tpu.memory_space<vmem>>, vector<1x16xf32>,
    return
  }
  func.func @transform_0(%arg0: i32) -> (i32, i32) {
    %c0_i32 = arith.constant 0 : i32
    %c0_i32_0 = arith.constant 0 : i32
    return %arg0, %c0_i32 : i32, i32
  }
  func.func @transform_1(%arg0: i32) -> (i32, i32) {
    %c0_i32 = arith.constant 0 : i32
    %c0_i32_0 = arith.constant 0 : i32
    return %arg0, %c0_i32 : i32, i32
  }
  func.func @transform_2(%arg0: i32) -> (i32, i32) {
    %c0_i32 = arith.constant 0 : i32
    %c0_i32_0 = arith.constant 0 : i32
    %c0_i32_1 = arith.constant 0 : i32
    return %c0_i32, %c0_i32_0 : i32, i32
  }
  func.func @transform_3(%arg0: i32) -> (i32, i32) {
    %c0_i32 = arith.constant 0 : i32
    %c0_i32_0 = arith.constant 0 : i32
    %c0_i32_1 = arith.constant 0 : i32
    return %c0_i32, %c0_i32_0 : i32, i32
  }
  func.func @transform_4(%arg0: i32) -> (i32, i32) {
    %c0_i32 = arith.constant 0 : i32
    %c0_i32_0 = arith.constant 0 : i32
    return %arg0, %c0_i32 : i32, i32
  }
}

</mosaic_0001>

<bundles_post_ra>
// kernel: tpu_custom_call.1
= control target key start
LH: loop header
LB: loop body
LE: loop exit
PB: predicated region body
PF: predicated region fallthrough
CT: control target
= control target key end

     0   :  { %9 = vsyncpa [#allocation3], 0  ;;  %s1615_s0 = inlined_call_operand.hbm [shape: bf16[128,32], index: 0, kind: input, shape index: {}]   ;;  %s1616_s1 = inlined_call_operand.hbm [shape: bf16[128,16], index: 1, kind: input, shape index: {}]   ;;  %s1617_s2 = inlined_call_operand.hbm [shape: bf16[32,16], index: 2, kind: input, shape index: {}]   ;;  %s1618_s3 = inlined_call_operand.hbm [shape: f32[1,16], index: 3, kind: input, shape index: {}]   ;;  %s1619_s4 = inlined_call_operand.hbm [shape: f32[1,16], index: 4, kind: output, shape index: {}]  }
   0x1   :  { %10 = vsyncpa [#allocation6], 0 }
   0x2   :  { %11 = vsyncpa [#allocation9], 0 }
   0x3   :  { %12 = vsyncpa [#allocation4], 0  ;;  %s1143_s15 = smov [#allocation5]   ;;  %s1144_s17 = smov [#allocation2]  }
   0x4   :  { %s30_s16 = sshll.u32 %s1143_s15, 4  ;;  %s18_s18 = sshll.u32 %s1144_s17, 4  ;;  %s31_s16 = int_to_ptr.vmem [resolvable:$true] %s30_s16  ;;  %s1176_s18 = int_to_ptr.vmem [resolvable:$true] %s18_s18 }
   0x5   :  { %s1025_s21 = scalar_lea.hbm %s1616_s1, 1024 }
   0x6   :  { %p1026_p0 = scmp.ne.s32.totalorder %s1616_s1, %s1025_s21  ;;  %p1029_p1 = scmp.lt.u32.totalorder %s1025_s21, %s1616_s1 }
   0x8   :  { %p1031_p2 = pnand %p1029_p1, %p1026_p0 }
   0xa   :  { %1034 = shalt.err (!%p1031_p2)
}
   0xb   :  { %s1035_s26 = scalar_lea.vmem %s31_s16, 1024  ;;  %p1040_p4 = scmp.lt.s32.totalorder %s31_s16, %s31_s16 }
   0xc   :  { %p1036_p3 = scmp.ne.s32.totalorder %s31_s16, %s1035_s26  ;;  %p1041_p5 = scmp.lt.s32.totalorder %s1035_s26, %s1035_s26 }
   0xe   :  { %p1042_p6 = por %p1041_p5, %p1040_p4 }
  0x10   :  { %p1043_p7 = pnand %p1042_p6, %p1036_p3 }
  0x12   :  { %1046 = shalt.err (!%p1043_p7)
}
  0x13   :  { %s1145_s27 = smov 64   ;;  %s1146_s28 = smov 4  }
  0x14   :  { %36 = dma.hbm_to_vmem [thread:$0]  %s1616_s1, 1024, %s31_s16, [#allocation6], %s1145_s27, %s1145_s27, %s1146_s28  }
  0x15   :  { %s1047_s7 = scalar_lea.hbm %s1615_s0, 1024 }
  0x16   :  { %p1048_p8 = scmp.ne.s32.totalorder %s1615_s0, %s1047_s7  ;;  %p1051_p9 = scmp.lt.u32.totalorder %s1047_s7, %s1615_s0 }
  0x18   :  { %p1053_p10 = pnand %p1051_p9, %p1048_p8 }
  0x1a   :  { %1056 = shalt.err (!%p1053_p10)
}
  0x1b   :  { %s1057_s12 = scalar_lea.vmem %s1176_s18, 1024  ;;  %p1062_p12 = scmp.lt.s32.totalorder %s1176_s18, %s1176_s18 }
  0x1c   :  { %p1058_p11 = scmp.ne.s32.totalorder %s1176_s18, %s1057_s12  ;;  %p1063_p13 = scmp.lt.s32.totalorder %s1057_s12, %s1057_s12 }
  0x1e   :  { %p1064_p0 = por %p1063_p13, %p1062_p12 }
  0x20   :  { %p1065_p1 = pnand %p1064_p0, %p1058_p11 }
  0x22   :  { %1068 = shalt.err (!%p1065_p1)
}
  0x23   :  { %24 = dma.hbm_to_vmem [thread:$0]  %s1615_s0, 1024, %s1176_s18, [#allocation3], %s1145_s27, %s1145_s27, %s1146_s28  }
  0x24   :  { %s1147_s14 = smov [#allocation7]   ;;  %s1148_s16 = smov [#allocation8]  }
  0x25   :  { %s42_s15 = sshll.u32 %s1147_s14, 4  ;;  %s55_s17 = sshll.u32 %s1148_s16, 4  ;;  %s43_s15 = int_to_ptr.vmem [resolvable:$true] %s42_s15  ;;  %s56_s17 = int_to_ptr.vmem [resolvable:$true] %s55_s17 }
  0x26   :  { %s1069_s21 = scalar_lea.hbm %s1617_s2, 256 }
  0x27   :  { %p1070_p2 = scmp.ne.s32.totalorder %s1617_s2, %s1069_s21  ;;  %p1073_p3 = scmp.lt.u32.totalorder %s1069_s21, %s1617_s2 }
  0x29   :  { %p1075_p4 = pnand %p1073_p3, %p1070_p2 }
  0x2b   :  { %1078 = shalt.err (!%p1075_p4)
}
  0x2c   :  { %s1079_s0 = scalar_lea.vmem %s43_s15, 256  ;;  %p1084_p6 = scmp.lt.s32.totalorder %s43_s15, %s43_s15 }
  0x2d   :  { %p1080_p5 = scmp.ne.s32.totalorder %s43_s15, %s1079_s0  ;;  %p1085_p7 = scmp.lt.s32.totalorder %s1079_s0, %s1079_s0 }
  0x2f   :  { %p1086_p8 = por %p1085_p7, %p1084_p6 }
  0x31   :  { %p1087_p9 = pnand %p1086_p8, %p1080_p5 }
  0x33   :  { %1090 = shalt.err (!%p1087_p9)
}
  0x34   :  { %48 = dma.hbm_to_vmem [thread:$0]  %s1617_s2, 256, %s43_s15, [#allocation6], %s1145_s27, %s1145_s27, %s1146_s28  }
  0x35   :  { %s1091_s5 = scalar_lea.hbm %s1618_s3, 16 }
  0x36   :  { %p1092_p10 = scmp.ne.s32.totalorder %s1618_s3, %s1091_s5  ;;  %p1095_p11 = scmp.lt.u32.totalorder %s1091_s5, %s1618_s3 }
  0x38   :  { %p1097_p12 = pnand %p1095_p11, %p1092_p10 }
  0x3a   :  { %1100 = shalt.err (!%p1097_p12)
}
  0x3b   :  { %s1101_s10 = scalar_lea.vmem %s56_s17, 16  ;;  %s1105_s11 = scalar_lea.vmem %s56_s17, 32 }
  0x3c   :  { %p1102_p13 = scmp.ne.s32.totalorder %s56_s17, %s1101_s10  ;;  %p1106_p0 = scmp.lt.s32.totalorder %s56_s17, %s56_s17 }
  0x3d   :  { %p1107_p1 = scmp.lt.s32.totalorder %s1105_s11, %s1101_s10 }
  0x3f   :  { %p1108_p2 = por %p1107_p1, %p1106_p0 }
  0x41   :  { %p1109_p3 = pnand %p1108_p2, %p1102_p13 }
  0x43   :  { %1112 = shalt.err (!%p1109_p3)
}
  0x44   :  { %58 = dma.hbm_to_vmem [thread:$0]  %s1618_s3, 16, %s56_s17, [#allocation9]  }
  0x45   :  { %1135 = dma.done.wait [#allocation3], 1024  }
  0x46   :  { %1136 = vsyncadd [#allocation3], 4294966272 }
  0x47   :  { %1137 = dma.done.wait [#allocation6], 1280  }
  0x48   :  { %1138 = vsyncadd [#allocation6], 4294966016 }
  0x49   :  { %1139 = dma.done.wait [#allocation9], 16  }
  0x4a   :  { %1140 = vsyncadd [#allocation9], 4294967280  ;;  %v951_v0 = vld [vmem:[#allocation7] sm:$0xff]   ;;  %v952_v1 = vld [vmem:[#allocation7 + $0x8] sm:$0xff]   ;;  %vm151_vm0 = vcmask 261120   ;;  %v1621_v40 = vmov 0.0  }
  0x4b   :  { %919 = vmatprep.subr.bf16.mxu0 %v951_v0  ;;  %939 = vmatprep.subr.bf16.mxu1 %v951_v0  ;;  %v953_v2 = vld [vmem:[#allocation2] sm:$0xff]   ;;  %v955_v4 = vld [vmem:[#allocation2 + $0x8] sm:$0xff]   ;;  %v957_v6 = vld [vmem:[#allocation2 + $0x10] sm:$0xff]   ;;  %s1150_s3 = smov [#allocation10]  }
  0x4c   :  { %920 = vmatpush3.bf16.msra.mxu0 %v951_v0  ;;  %941 = vmatpush3.bf16.msra.mxu1 %v951_v0  ;;  %v954_v3 = vld [vmem:[#allocation2 + $0x20] sm:$0xff]   ;;  %v956_v5 = vld [vmem:[#allocation2 + $0x28] sm:$0xff]   ;;  %v958_v7 = vld [vmem:[#allocation2 + $0x30] sm:$0xff]   ;;  %s824_s28 = sshll.u32 %s1150_s3, 4  ;;  %s825_s28 = int_to_ptr.vmem [resolvable:$true] %s824_s28 }
  0x4d   :  { %921 = vmatprep.subr.bf16.mxu0 %v952_v1  ;;  %940 = vmatprep.subr.bf16.mxu1 %v952_v1  ;;  %v959_v8 = vld [vmem:[#allocation2 + $0x18] sm:$0xff]   ;;  %v906_v10 = vld [vmem:[#allocation5 + $0x28] sm:$0xff]   ;;  %v871_v13 = vld [vmem:[#allocation5] sm:$0xff]   ;;  %s1113_s12 = scalar_lea.vmem %s825_s28, 16  ;;  %s1117_s1 = scalar_lea.vmem %s825_s28, 32 }
  0x4e   :  { %923 = vmatprep.mubr.msk.bf16.mxu0 %vm151_vm0, %v953_v2  ;;  %931 = vmatprep.mubr.msk.bf16.mxu1 %vm151_vm0, %v954_v3  ;;  %v960_v9 = vld [vmem:[#allocation2 + $0x38] sm:$0xff]   ;;  %v902_v11 = vld [vmem:[#allocation5 + $0x8] sm:$0xff]   ;;  %v1248_v12 = vunpack.c.l.bf16 %v906_v10  ;;  %v905_v14 = vld [vmem:[#allocation5 + $0x20] sm:$0xff]   ;;  %v1253_v17 = vunpack.c.l.bf16 %v871_v13  ;;  %v1259_v20 = vunpack.c.h.bf16 %v906_v10  ;;  %v1269_v28 = vunpack.c.h.bf16 %v871_v13  ;;  %p1114_p4 = scmp.ne.s32.totalorder %s825_s28, %s1113_s12  ;;  %p1118_p5 = scmp.lt.s32.totalorder %s825_s28, %s825_s28 }
  0x4f   :  { %v1251_v16 = vunpack.c.l.bf16 %v902_v11  ;;  %v1255_v18 = vunpack.c.l.bf16 %v905_v14  ;;  %v1257_v19 = vunpack.c.h.bf16 %v902_v11  ;;  %v1265_v25 = vunpack.c.h.bf16 %v905_v14  ;;  %v908_v29 = vld [vmem:[#allocation5 + $0x38] sm:$0xff]   ;;  %v1275_v35 = vld [vmem:[#allocation5 + $0x30] sm:$0xff]   ;;  %p1119_p6 = scmp.lt.s32.totalorder %s1117_s1, %s1113_s12 }
  0x50   :  { %922 = vmatpush3.bf16.msra.mxu0 %v952_v1  ;;  %942 = vmatpush3.bf16.msra.mxu1 %v952_v1  ;;  %v491_v15 = vsub.f32 4.0, %v1248_v12  ;;  %v481_v24 = vsub.f32 4.0, %v1253_v17  ;;  %v492_v26 = vsub.f32 4.0, %v1259_v20  ;;  %v904_v34 = vld [vmem:[#allocation5 + $0x18] sm:$0xff]   ;;  %v482_v38 = vsub.f32 4.0, %v1269_v28  ;;  %v1289_v45 = vld [vmem:[#allocation5 + $0x10] sm:$0xff]  }
  0x51   :  { %v483_v21 = vsub.f32 4.0, %v1251_v16  ;;  %v489_v23 = vsub.f32 4.0, %v1255_v18  ;;  %v484_v27 = vsub.f32 4.0, %v1257_v19  ;;  %v490_v31 = vsub.f32 4.0, %v1265_v25  ;;  %v1301_v55 = vld [vmem:[#allocation8] ss:$0 sm:$0xff]  ;;  %p1120_p7 = por %p1119_p6, %p1118_p5 }
  0x52   :  { %v507_v22 = vmin.f32 %v1248_v12, %v491_v15  ;;  %v497_v33 = vmin.f32 %v1253_v17, %v481_v24  ;;  %v508_v36 = vmin.f32 %v1259_v20, %v492_v26  ;;  %v1280_v39 = vunpack.c.l.bf16 %v908_v29 }
  0x53   :  { %924 = vmatmul.mubr.msk.bf16.vlgmr.msra.gmra.mrb[0].mxu0 %vm151_vm0, %v955_v4  ;;  %932 = vmatmul.mubr.msk.bf16.vlgmr.msra.gmra.mrb[0].mxu1 %vm151_vm0, %v956_v5  ;;  %v499_v30 = vmin.f32 %v1251_v16, %v483_v21  ;;  %v505_v32 = vmin.f32 %v1255_v18, %v489_v23  ;;  %v500_v37 = vmin.f32 %v1257_v19, %v484_v27  ;;  %v1284_v43 = vunpack.c.l.bf16 %v904_v34  ;;  %p1121_p8 = pnand %p1120_p7, %p1114_p4 }
  0x54   :  { %927 = vmatprep.mubr.msk.bf16.mxu0 %vm151_vm0, %v957_v6  ;;  %935 = vmatprep.mubr.msk.bf16.mxu1 %vm151_vm0, %v958_v7  ;;  %vm523_vm1 = vcmp.gt.f32.partialorder %v507_v22, 0.5  ;;  %vm555_vm2 = vcmp.gt.f32.partialorder %v507_v22, 1.5  ;;  %v506_v42 = vmin.f32 %v1265_v25, %v490_v31  ;;  %v1287_v44 = vunpack.c.l.bf16 %v1275_v35 }
  0x55   :  { %v539_v41 = vsel %vm523_vm1, 1.3862944, %v1621_v40  ;;  %vm515_vm3 = vcmp.gt.f32.partialorder %v499_v30, 0.5  ;;  %vm521_vm4 = vcmp.gt.f32.partialorder %v505_v32, 0.5  ;;  %vm513_vm5 = vcmp.gt.f32.partialorder %v497_v33, 0.5 }
  0x56   :  { %1627 = vst [vmem:[#allocation15_spill] sm:$0xff] %v1287_v44  ;;  %vm524_vm6 = vcmp.gt.f32.partialorder %v508_v36, 0.5  ;;  %vm516_vm7 = vcmp.gt.f32.partialorder %v500_v37, 0.5  ;;  %v498_v46 = vmin.f32 %v1269_v28, %v482_v38  ;;  %v495_v47 = vsub.f32 4.0, %v1280_v39 }
  0x57   :  { %v1293_v48 = vsel %vm555_vm2, 1.7917595, %v539_v41  ;;  %v531_v49 = vsel %vm515_vm3, 1.3862944, %v1621_v40  ;;  %vm547_vm8 = vcmp.gt.f32.partialorder %v499_v30, 1.5  ;;  %vm553_vm9 = vcmp.gt.f32.partialorder %v505_v32, 1.5 }
  0x58   :  { %v537_v50 = vsel %vm521_vm4, 1.3862944, %v1621_v40  ;;  %v529_v51 = vsel %vm513_vm5, 1.3862944, %v1621_v40  ;;  %vm522_vm10 = vcmp.gt.f32.partialorder %v506_v42, 0.5  ;;  %v487_v52 = vsub.f32 4.0, %v1284_v43 }
  0x59   :  { %vm545_vm11 = vcmp.gt.f32.partialorder %v497_v33, 1.5  ;;  %v540_v53 = vsel %vm524_vm6, 1.3862944, %v1621_v40  ;;  %vm556_vm12 = vcmp.gt.f32.partialorder %v508_v36, 1.5  ;;  %v532_v54 = vsel %vm516_vm7, 1.3862944, %v1621_v40 }
  0x5a   :  { %vm548_vm13 = vcmp.gt.f32.partialorder %v500_v37, 1.5  ;;  %vm514_vm14 = vcmp.gt.f32.partialorder %v498_v46, 0.5  ;;  %v511_v56 = vmin.f32 %v1280_v39, %v495_v47  ;;  %v493_v57 = vsub.f32 4.0, %v1287_v44 }
  0x5b   :  { %928 = vmatmul.mubr.msk.bf16.gmra.mrb[4].mxu0 %vm151_vm0, %v959_v8  ;;  %936 = vmatmul.mubr.msk.bf16.gmra.mrb[4].mxu1 %vm151_vm0, %v960_v9  ;;  %v1306_v58 = vunpack.c.l.bf16 %v1289_v45  ;;  %v1309_v59 = vsel %vm547_vm8, 1.7917595, %v531_v49  ;;  %v538_v60 = vsel %vm522_vm10, 1.3862944, %v1621_v40  ;;  %vm554_vm15 = vcmp.gt.f32.partialorder %v506_v42, 1.5 }
  0x5c   :  { %v1313_v61 = vsel %vm553_vm9, 1.7917595, %v537_v50  ;;  %v1315_v62 = vsel %vm545_vm11, 1.7917595, %v529_v51  ;;  %v1317_v63 = vsel %vm556_vm12, 1.7917595, %v540_v53  ;;  %v1320_v0 = vmin.f32 %v1284_v43, %v487_v52 }
  0x5d   :  { %v1322_v1 = vunpack.c.h.bf16 %v904_v34  ;;  %v1324_v2 = vsel %vm548_vm13, 1.7917595, %v532_v54  ;;  %v530_v3 = vsel %vm514_vm14, 1.3862944, %v1621_v40  ;;  %vm546_vm0 = vcmp.gt.f32.partialorder %v498_v46, 1.5 }
  0x5e   :  { %v1327_v6 = vunpack.c.h.bf16 %v908_v29  ;;  %v1329_v7 = vsel %vm554_vm15, 1.7917595, %v538_v60  ;;  %vm527_vm1 = vcmp.gt.f32.partialorder %v511_v56, 0.5  ;;  %v1332_v8 = vmin.f32 %v1287_v44, %v493_v57 }
  0x5f   :  { %vm559_vm2 = vcmp.gt.f32.partialorder %v511_v56, 1.5  ;;  %v485_v14 = vsub.f32 4.0, %v1306_v58  ;;  %v1340_v24 = vsel %vm546_vm0, 1.7917595, %v530_v3  ;;  %vm519_vm3 = vcmp.gt.f32.partialorder %v1320_v0, 0.5 }
  0x60   :  { %v1348_v31 = vunpack.c.h.bf16 %v1275_v35  ;;  %v543_v32 = vsel %vm527_vm1, 1.3862944, %v1621_v40  ;;  %vm525_vm4 = vcmp.gt.f32.partialorder %v1332_v8, 0.5  ;;  %v1362_v35 = vsel %vm519_vm3, 1.3862944, %v1621_v40 }
  0x61   :  { %v1367_v47 = vunpack.c.h.bf16 %v1289_v45  ;;  %v1370_v49 = vsel %vm559_vm2, 1.7917595, %v543_v32  ;;  %v541_v52 = vsel %vm525_vm4, 1.3862944, %v1621_v40  ;;  %vm551_vm5 = vcmp.gt.f32.partialorder %v1320_v0, 1.5 }
  0x62   :  { %1628 = vst [vmem:[#allocation16_spill] sm:$0xff] %v1348_v31  ;;  %v494_v53 = vsub.f32 4.0, %v1348_v31  ;;  %vm557_vm6 = vcmp.gt.f32.partialorder %v1332_v8, 1.5  ;;  %vm641_vm9 = vcmask 130048   ;;  %vm772_vm2 = vcmask 1041409  }
  0x63   :  { %1629 = vst [vmem:[#allocation17_spill] sm:$0xff] %v1367_v47  ;;  %vm774_vm3 = vcmask 1042434   ;;  %vm776_vm4 = vcmask 1043459  }
  0x64   :  { %v1402_v44 = vmin.f32 %v1348_v31, %v494_v53  ;;  %v1415_v53 = vsel %vm551_vm5, 1.7917595, %v1362_v35  ;;  %vm778_vm5 = vcmask 1044484  }
  0x66   :  { %vm526_vm11 = vcmp.gt.f32.partialorder %v1402_v44, 0.5  ;;  %vm558_vm13 = vcmp.gt.f32.partialorder %v1402_v44, 1.5 }
 0x126   :  { %v925_v4 = vpop.f32.mrb[0].mxu0  ;;  %v933_v5 = vpop.f32.mrb[0].mxu1 }
 0x127   :  { %v219_v9 = vadd.f32 %v925_v4, %v1301_v55  ;;  %v251_v10 = vadd.f32 %v933_v5, %v1301_v55  ;;  %v210_v11 = vpop.f32.mrb[1].mxu0  ;;  %v242_v13 = vpop.f32.mrb[1].mxu1  ;;  %v501_v5 = vmin.f32 %v1306_v58, %v485_v14 }
 0x128   :  { %v211_v15 = vadd.f32 %v1301_v55, %v210_v11  ;;  %v243_v21 = vadd.f32 %v1301_v55, %v242_v13  ;;  %v926_v22 = vpop.f32.mrb[2].mxu0  ;;  %v934_v23 = vpop.f32.mrb[2].mxu1 }
 0x129   :  { %v1343_v26 = vclamps-f32 %v219_v9, 15.0  ;;  %v1345_v27 = vclamps-f32 %v251_v10, 15.0  ;;  %v213_v29 = vpop.f32.mrb[3].mxu0  ;;  %v245_v30 = vpop.f32.mrb[3].mxu1  ;;  %v222_v36 = vadd.f32 %v926_v22, %v1301_v55  ;;  %v254_v38 = vadd.f32 %v934_v23, %v1301_v55 }
 0x12a   :  { %v1352_v33 = vclamps-f32 %v211_v15, 15.0  ;;  %v1354_v34 = vclamps-f32 %v243_v21, 15.0  ;;  %v214_v41 = vadd.f32 %v1301_v55, %v213_v29  ;;  %v246_v21 = vadd.f32 %v1301_v55, %v245_v30 }
 0x12b   :  { %v355_v37 = vand.u32 2147483647, %v1343_v26  ;;  %v363_v42 = vand.u32 2147483647, %v1345_v27  ;;  %v1375_v60 = vclamps-f32 %v222_v36, 15.0  ;;  %v1378_v56 = vclamps-f32 %v254_v38, 15.0 }
 0x12c   :  { %v353_v46 = vand.u32 2147483647, %v1352_v33  ;;  %v361_v51 = vand.u32 2147483647, %v1354_v34  ;;  %v1380_v10 = vclamps-f32 %v214_v41, 15.0  ;;  %v486_v23 = vsub.f32 4.0, %v1367_v47 }
 0x12d   :  { %v371_v50 = vsub.f32 0.0, %v355_v37  ;;  %v379_v54 = vsub.f32 0.0, %v363_v42  ;;  %v356_v32 = vand.u32 2147483647, %v1375_v60  ;;  %v364_v14 = vand.u32 2147483647, %v1378_v56 }
 0x12e   :  { %v369_v57 = vsub.f32 0.0, %v353_v46  ;;  %v929_v3 = vpop.f32.mrb[4].mxu0  ;;  %v937_v4 = vpop.f32.mrb[4].mxu1  ;;  %v377_v9 = vsub.f32 0.0, %v361_v51  ;;  %vm517_vm7 = vcmp.gt.f32.partialorder %v501_v5, 0.5  ;;  %vm549_vm8 = vcmp.gt.f32.partialorder %v501_v5, 1.5 }
 0x12f   :  { %v389_v45 = vmul.f32 1.442695, %v371_v50  ;;  %v226_v11 = vpop.f32.mrb[5].mxu0  ;;  %v405_v13 = vmul.f32 1.442695, %v379_v54  ;;  %v258_v22 = vpop.f32.mrb[5].mxu1  ;;  %v235_v51 = vadd.f32 %v929_v3, %v1301_v55 }
 0x130   :  { %v385_v15 = vmul.f32 1.442695, %v369_v57  ;;  %v401_v29 = vmul.f32 1.442695, %v377_v9  ;;  %v930_v36 = vpop.f32.mrb[6].mxu0  ;;  %v1387_v37 = vpop.f32.mrb[6].mxu1  ;;  %v227_v9 = vadd.f32 %v1301_v55, %v226_v11  ;;  %v259_v11 = vadd.f32 %v1301_v55, %v258_v22 }
 0x131   :  { %961 = vpow2.f32 %v389_v45  ;;  %v1389_v38 = vpop.f32.mrb[7].mxu0  ;;  %v372_v30 = vsub.f32 0.0, %v356_v32  ;;  %v354_v41 = vand.u32 2147483647, %v1380_v10  ;;  %v261_v42 = vpop.f32.mrb[7].mxu1  ;;  %v380_v46 = vsub.f32 0.0, %v364_v14 }
 0x132   :  { %963 = vpow2.f32 %v405_v13  ;;  %v1393_v50 = vclamps-f32 %v246_v21, 15.0  ;;  %v267_v45 = vadd.f32 %v937_v4, %v1301_v55  ;;  %v533_v32 = vsel %vm517_vm7, 1.3862944, %v1621_v40 }
 0x133   :  { %965 = vpow2.f32 %v385_v15  ;;  %v391_v54 = vmul.f32 1.442695, %v372_v30  ;;  %v370_v57 = vsub.f32 0.0, %v354_v41  ;;  %v407_v13 = vmul.f32 1.442695, %v380_v46 }
 0x134   :  { %967 = vpow2.f32 %v401_v29  ;;  %v362_v15 = vand.u32 2147483647, %v1393_v50  ;;  %v1404_v29 = vclamps-f32 %v235_v51, 15.0  ;;  %v1406_v3 = vclamps-f32 %v267_v45, 15.0 }
 0x135   :  { %969 = vpow2.f32 %v391_v54  ;;  %v387_v21 = vmul.f32 1.442695, %v370_v57  ;;  %v1408_v4 = vclamps-f32 %v227_v9, 15.0  ;;  %v1419_v41 = vsel %vm557_vm6, 1.7917595, %v541_v52 }
 0x136   :  { %971 = vpow2.f32 %v407_v13  ;;  %v378_v14 = vsub.f32 0.0, %v362_v15  ;;  %v359_v30 = vand.u32 2147483647, %v1404_v29  ;;  %1630 = vst [vmem:[#allocation18_spill] sm:$0xff] %v1419_v41  ;;  %v367_v51 = vand.u32 2147483647, %v1406_v3 }
 0x137   :  { %973 = vpow2.f32 %v387_v21  ;;  %v1423_v54 = vsel %vm549_vm8, 1.7917595, %v533_v32  ;;  %v1426_v22 = vmin.f32 %v1367_v47, %v486_v23  ;;  %v357_v9 = vand.u32 2147483647, %v1408_v4 }
 0x138   :  { %v403_v46 = vmul.f32 1.442695, %v378_v14  ;;  %1631 = vst [vmem:[#allocation19_spill] sm:$0xff] %v1423_v54  ;;  %v375_v45 = vsub.f32 0.0, %v359_v30  ;;  %v383_v13 = vsub.f32 0.0, %v367_v51  ;;  %v1431_v15 = vclamps-f32 %v259_v11, 15.0 }
 0x139   :  { %v1436_v23 = vmul.f32 %v1251_v16, %v1343_v26  ;;  %v238_v14 = vadd.f32 %v930_v36, %v1301_v55  ;;  %v373_v35 = vsub.f32 0.0, %v357_v9  ;;  %v270_v16 = vadd.f32 %v1387_v37, %v1301_v55 }
 0x13a   :  { %975 = vpow2.f32 %v403_v46  ;;  %v397_v0 = vmul.f32 1.442695, %v375_v45  ;;  %v413_v51 = vmul.f32 1.442695, %v383_v13  ;;  %v365_v11 = vand.u32 2147483647, %v1431_v15 }
 0x13b   :  { %v962_v57 = vpop.eup %961  ;;  %v1441_v32 = vclamps-f32 %v238_v14, 15.0  ;;  %v230_v45 = vadd.f32 %v1301_v55, %v1389_v38  ;;  %v262_v9 = vadd.f32 %v1301_v55, %v261_v42  ;;  %v1450_v13 = vmul.f32 %v1248_v12, %v1345_v27 }
 0x13c   :  { %v964_v8 = vpop.eup %963  ;;  %v419_v52 = vadd.f32 1.0, %v962_v57  ;;  %v347_v57 = vmax.f32 %v1345_v27, 0.0  ;;  %v381_v36 = vsub.f32 0.0, %v365_v11  ;;  %v393_v37 = vmul.f32 1.442695, %v373_v35 }
 0x13d   :  { %v966_v5 = vpop.eup %965  ;;  %v427_v21 = vadd.f32 1.0, %v964_v8  ;;  %v1453_v38 = vclamps-f32 %v270_v16, 15.0  ;;  %v337_v55 = vmax.f32 %v1352_v33, 0.0  ;;  %v1456_v42 = vclamps-f32 %v230_v45, 15.0 }
 0x13e   :  { %v968_v30 = vpop.eup %967  ;;  %977 = vlog2.f32 %v419_v52  ;;  %v417_v40 = vadd.f32 1.0, %v966_v5  ;;  %v1458_v12 = vclamps-f32 %v262_v9, 15.0  ;;  %v1468_v16 = vmul.f32 %v1255_v18, %v1354_v34 }
 0x13f   :  { %979 = vlog2.f32 %v427_v21  ;;  %v425_v46 = vadd.f32 1.0, %v968_v30  ;;  %v970_v8 = vpop.eup %969  ;;  %v409_v30 = vmul.f32 1.442695, %v381_v36  ;;  %v340_v9 = vmax.f32 %v1375_v60, 0.0 }
 0x140   :  { %981 = vlog2.f32 %v417_v40  ;;  %v972_v52 = vpop.eup %971  ;;  %v420_v5 = vadd.f32 1.0, %v970_v8  ;;  %v360_v40 = vand.u32 2147483647, %v1441_v32  ;;  %1632 = vst [vmem:[#allocation20_spill] sm:$0xff] %v1458_v12  ;;  %v345_v8 = vmax.f32 %v1354_v34, 0.0 }
 0x141   :  { %983 = vlog2.f32 %v425_v46  ;;  %v974_v21 = vpop.eup %973  ;;  %v428_v14 = vadd.f32 1.0, %v972_v52  ;;  %v366_v18 = vand.u32 2147483647, %v1458_v12  ;;  %vm518_vm10 = vcmp.gt.f32.partialorder %v1426_v22, 0.5 }
 0x142   :  { %985 = vpow2.f32 %v397_v0  ;;  %v418_v46 = vadd.f32 1.0, %v974_v21  ;;  %v376_v11 = vsub.f32 0.0, %v360_v40  ;;  %v1462_v0 = vmul.f32 %v1253_v17, %v1352_v33 }
 0x143   :  { %987 = vpow2.f32 %v413_v51  ;;  %v368_v51 = vand.u32 2147483647, %v1453_v38  ;;  %v358_v17 = vand.u32 2147483647, %v1456_v42  ;;  %v348_v40 = vmax.f32 %v1378_v56, 0.0 }
 0x144   :  { %989 = vlog2.f32 %v420_v5  ;;  %v976_v27 = vpop.eup %975  ;;  %v399_v35 = vmul.f32 1.442695, %v376_v11  ;;  %v1474_v5 = vmul.f32 %v1257_v19, %v1375_v60  ;;  %v382_v11 = vsub.f32 0.0, %v366_v18 }
 0x145   :  { %991 = vlog2.f32 %v428_v14  ;;  %v426_v36 = vadd.f32 1.0, %v976_v27  ;;  %v384_v52 = vsub.f32 0.0, %v368_v51  ;;  %v374_v14 = vsub.f32 0.0, %v358_v17 }
 0x146   :  { %993 = vlog2.f32 %v418_v46  ;;  %v1480_v46 = vmul.f32 %v1259_v20, %v1378_v56  ;;  %v411_v41 = vmul.f32 1.442695, %v382_v11  ;;  %vm550_vm12 = vcmp.gt.f32.partialorder %v1426_v22, 1.5 }
 0x147   :  { %995 = vpow2.f32 %v393_v37  ;;  %v415_v21 = vmul.f32 1.442695, %v384_v52  ;;  %v395_v51 = vmul.f32 1.442695, %v374_v14  ;;  %vm780_vm6 = vcmask 1045509  }
 0x148   :  { %v978_v45 = vpop.eup %977  ;;  %997 = vpow2.f32 %v409_v30  ;;  %vm782_vm7 = vcmask 1046534   ;;  %vm784_vm8 = vcmask 1047559  }
 0x149   :  { %v980_v33 = vpop.eup %979  ;;  %999 = vlog2.f32 %v426_v36  ;;  %v438_v27 = vmul.f32 0.6931472, %v978_v45 }
 0x14a   :  { %v982_v34 = vpop.eup %981  ;;  %1001 = vpow2.f32 %v399_v35  ;;  %v454_v37 = vmul.f32 0.6931472, %v980_v33  ;;  %v1633_v35 = vmax.f32 %v1343_v26, 0.0 }
 0x14b   :  { %v984_v30 = vpop.eup %983  ;;  %v434_v19 = vmul.f32 0.6931472, %v982_v34  ;;  %1003 = vpow2.f32 %v415_v21 }
 0x14c   :  { %v986_v60 = vpop.eup %985  ;;  %v475_v36 = vadd.f32 %v454_v37, %v347_v57  ;;  %v450_v31 = vmul.f32 0.6931472, %v984_v30  ;;  %v467_v52 = vadd.f32 %v438_v27, %v1633_v35  ;;  %1005 = vpow2.f32 %v395_v51 }
 0x14d   :  { %v988_v47 = vpop.eup %987  ;;  %v423_v12 = vadd.f32 1.0, %v986_v60  ;;  %v465_v17 = vadd.f32 %v434_v19, %v337_v55  ;;  %v338_v35 = vmax.f32 %v1380_v10, 0.0 }
 0x14e   :  { %v990_v33 = vpop.eup %989  ;;  %v431_v54 = vadd.f32 1.0, %v988_v47  ;;  %v603_v20 = vmul.f32 4.0, %v475_v36  ;;  %v473_v56 = vadd.f32 %v450_v31, %v345_v8  ;;  %v595_v45 = vmul.f32 4.0, %v467_v52 }
 0x14f   :  { %v992_v18 = vpop.eup %991  ;;  %1007 = vlog2.f32 %v423_v12  ;;  %v593_v34 = vmul.f32 4.0, %v465_v17  ;;  %v440_v21 = vmul.f32 0.6931472, %v990_v33 }
 0x150   :  { %v994_v14 = vpop.eup %993  ;;  %1009 = vlog2.f32 %v431_v54  ;;  %v619_v57 = vsub.f32 %v1450_v13, %v603_v20  ;;  %v601_v37 = vmul.f32 4.0, %v473_v56  ;;  %v456_v30 = vmul.f32 0.6931472, %v992_v18 }
 0x151   :  { %v996_v11 = vpop.eup %995  ;;  %1011 = vpow2.f32 %v411_v41  ;;  %v611_v26 = vsub.f32 %v1436_v23, %v595_v45  ;;  %v609_v47 = vsub.f32 %v1462_v0, %v593_v34  ;;  %v468_v55 = vadd.f32 %v440_v21, %v340_v9 }
 0x152   :  { %v998_v27 = vpop.eup %997  ;;  %v421_v31 = vadd.f32 1.0, %v996_v11  ;;  %v635_v12 = vadd.f32 %v619_v57, %v1293_v48  ;;  %v617_v8 = vsub.f32 %v1468_v16, %v601_v37  ;;  %v476_v19 = vadd.f32 %v456_v30, %v348_v40 }
 0x153   :  { %v1000_v60 = vpop.eup %999  ;;  %v429_v54 = vadd.f32 1.0, %v998_v27  ;;  %v627_v13 = vadd.f32 %v611_v26, %v1309_v59  ;;  %v625_v51 = vadd.f32 %v609_v47, %v1315_v62  ;;  %v596_v36 = vmul.f32 4.0, %v468_v55 }
 0x154   :  { %v1002_v41 = vpop.eup %1001  ;;  %1013 = vlog2.f32 %v421_v31  ;;  %v672_v23 = vsel %vm641_vm9, %v635_v12, 0.0  ;;  %v633_v0 = vadd.f32 %v617_v8, %v1313_v61  ;;  %v604_v9 = vmul.f32 4.0, %v476_v19 }
 0x155   :  { %1015 = vlog2.f32 %v429_v54  ;;  %v424_v48 = vadd.f32 1.0, %v1002_v41  ;;  %673 = vadd.xlane.f32.xlu1 %v672_v23  ;;  %v648_v16 = vsel %vm641_vm9, %v627_v13, 0.0  ;;  %v1004_v40 = vpop.eup %1003  ;;  %v346_v59 = vmax.f32 %v1393_v50, 0.0 }
 0x156   :  { %649 = vadd.xlane.f32.xlu0 %v648_v16  ;;  %v620_v62 = vsub.f32 %v1480_v46, %v604_v9  ;;  %v612_v52 = vsub.f32 %v1474_v5, %v596_v36  ;;  %v452_v17 = vmul.f32 0.6931472, %v1000_v60  ;;  %v578_v61 = vmul.f32 %v1269_v28, %v1380_v10  ;;  %v1006_v56 = vpop.eup %1005 }
 0x157   :  { %1017 = vlog2.f32 %v424_v48  ;;  %v432_v33 = vadd.f32 1.0, %v1004_v40  ;;  %v436_v20 = vmul.f32 0.6931472, %v994_v14  ;;  %v666_v18 = vsel %vm641_vm9, %v633_v0, 0.0 }
 0x158   :  { %v642_v45 = vsel %vm641_vm9, %v625_v51, 0.0  ;;  %v636_v34 = vadd.f32 %v620_v62, %v1317_v63  ;;  %v474_v21 = vadd.f32 %v452_v17, %v346_v59  ;;  %v422_v46 = vadd.f32 1.0, %v1006_v56 }
 0x159   :  { %v1008_v57 = vpop.eup %1007  ;;  %1019 = vlog2.f32 %v432_v33  ;;  %667 = vadd.xlane.f32.xlu1 %v666_v18  ;;  %v628_v5 = vadd.f32 %v612_v52, %v1324_v2  ;;  %v466_v37 = vadd.f32 %v436_v20, %v338_v35  ;;  %v586_v28 = vmul.f32 %v1265_v25, %v1393_v50 }
 0x15a   :  { %v1010_v30 = vpop.eup %1009  ;;  %v343_v10 = vmax.f32 %v1404_v29, 0.0  ;;  %643 = vadd.xlane.f32.xlu0 %v642_v45  ;;  %v602_v14 = vmul.f32 4.0, %v474_v21  ;;  %v446_v11 = vmul.f32 0.6931472, %v1008_v57  ;;  %v351_v63 = vmax.f32 %v1406_v3, 0.0 }
 0x15b   :  { %v1012_v26 = vpop.eup %1011  ;;  %1021 = vlog2.f32 %v422_v46  ;;  %v594_v47 = vmul.f32 4.0, %v466_v37  ;;  %v462_v55 = vmul.f32 0.6931472, %v1010_v30  ;;  %v675_v31 = vsel %vm641_vm9, %v636_v34, 0.0  ;;  %v1636_v34 = vld [vmem:[#allocation15_spill] sm:$0xff] }
 0x15c   :  { %v430_v27 = vadd.f32 1.0, %v1012_v26  ;;  %v618_v2 = vsub.f32 %v586_v28, %v602_v14  ;;  %v471_v12 = vadd.f32 %v446_v11, %v343_v10  ;;  %v583_v25 = vmul.f32 %v1284_v43, %v1404_v29  ;;  %v1637_v14 = vld [vmem:[#allocation19_spill] sm:$0xff] }
 0x15d   :  { %676 = vadd.xlane.f32.xlu1 %v675_v31  ;;  %v651_v50 = vsel %vm641_vm9, %v628_v5, 0.0  ;;  %v610_v8 = vsub.f32 %v578_v61, %v594_v47  ;;  %v479_v19 = vadd.f32 %v462_v55, %v351_v63  ;;  %v591_v54 = vmul.f32 %v1280_v39, %v1406_v3  ;;  %v1639_v55 = vld [vmem:[#allocation18_spill] sm:$0xff] }
 0x15e   :  { %v1014_v60 = vpop.eup %1013  ;;  %1023 = vlog2.f32 %v430_v27  ;;  %652 = vadd.xlane.f32.xlu0 %v651_v50  ;;  %v634_v13 = vadd.f32 %v618_v2, %v1329_v7  ;;  %v599_v51 = vmul.f32 4.0, %v471_v12  ;;  %v341_v41 = vmax.f32 %v1408_v4, 0.0  ;;  %v1640_v12 = vld [vmem:[#allocation20_spill] sm:$0xff] }
 0x15f   :  { %v1016_v36 = vpop.eup %1015  ;;  %v626_v23 = vadd.f32 %v610_v8, %v1340_v24  ;;  %v607_v43 = vmul.f32 4.0, %v479_v19  ;;  %v442_v29 = vmul.f32 0.6931472, %v1014_v60  ;;  %v349_v0 = vmax.f32 %v1431_v15, 0.0 }
 0x160   :  { %v669_v9 = vsel %vm641_vm9, %v634_v13, 0.0  ;;  %v615_v35 = vsub.f32 %v583_v25, %v599_v51  ;;  %v458_v48 = vmul.f32 0.6931472, %v1016_v36  ;;  %v1634_v24 = vsub.f32 4.0, %v1322_v1 }
 0x161   :  { %v1018_v39 = vpop.eup %1017  ;;  %670 = vadd.xlane.f32.xlu1 %v669_v9  ;;  %v645_v7 = vsel %vm641_vm9, %v626_v23, 0.0  ;;  %v623_v3 = vsub.f32 %v591_v54, %v607_v43  ;;  %v469_v16 = vadd.f32 %v442_v29, %v341_v41  ;;  %v344_v59 = vmax.f32 %v1441_v32, 0.0  ;;  %v1641_v54 = vld [vmem:[#allocation17_spill] sm:$0xff]  ;;  %v1642_v9 = vld [vmem:[#allocation16_spill] sm:$0xff] }
 0x162   :  { %v504_v40 = vmin.f32 %v1322_v1, %v1634_v24  ;;  %646 = vadd.xlane.f32.xlu0 %v645_v7  ;;  %v631_v62 = vadd.f32 %v615_v35, %v1415_v53  ;;  %v477_v52 = vadd.f32 %v458_v48, %v349_v0  ;;  %v448_v17 = vmul.f32 0.6931472, %v1018_v39 }
 0x163   :  { %v1020_v61 = vpop.eup %1019  ;;  %v581_v33 = vmul.f32 %v1306_v58, %v1408_v4  ;;  %v639_v20 = vadd.f32 %v623_v3, %v1370_v49  ;;  %v597_v56 = vmul.f32 4.0, %v469_v16  ;;  %v1635_v18 = vsub.f32 4.0, %v1327_v6 }
 0x164   :  { %v589_v21 = vmul.f32 %v1636_v34, %v1431_v15  ;;  %v605_v57 = vmul.f32 4.0, %v477_v52  ;;  %v464_v53 = vmul.f32 0.6931472, %v1020_v61  ;;  %v472_v46 = vadd.f32 %v448_v17, %v344_v59 }
 0x165   :  { %v512_v45 = vmin.f32 %v1327_v6, %v1635_v18  ;;  %v1022_v5 = vpop.eup %1021  ;;  %v352_v37 = vmax.f32 %v1453_v38, 0.0  ;;  %v684_v58 = vsel %vm641_vm9, %v639_v20, 0.0  ;;  %v660_v49 = vsel %vm641_vm9, %v631_v62, 0.0 }
 0x166   :  { %v613_v4 = vsub.f32 %v581_v33, %v597_v56  ;;  %v342_v30 = vmax.f32 %v1456_v42, 0.0  ;;  %685 = vadd.xlane.f32.xlu1 %v684_v58  ;;  %661 = vadd.xlane.f32.xlu0 %v660_v49  ;;  %v621_v28 = vsub.f32 %v589_v21, %v605_v57  ;;  %v444_v10 = vmul.f32 0.6931472, %v1022_v5 }
 0x167   :  { %vm520_vm14 = vcmp.gt.f32.partialorder %v504_v40, 0.5  ;;  %v1638_v11 = vmov 0.0   ;;  %v480_v63 = vadd.f32 %v464_v53, %v352_v37  ;;  %vm528_vm15 = vcmp.gt.f32.partialorder %v512_v45, 0.5 }
 0x168   :  { %v629_v15 = vadd.f32 %v613_v4, %v1637_v14  ;;  %v534_v26 = vsel %vm518_vm10, 1.3862944, %v1638_v11  ;;  %v1024_v47 = vpop.eup %1023  ;;  %v637_v27 = vadd.f32 %v621_v28, %v1639_v55  ;;  %v470_v31 = vadd.f32 %v444_v10, %v342_v30 }
 0x169   :  { %vm552_vm0 = vcmp.gt.f32.partialorder %v504_v40, 1.5  ;;  %v600_v2 = vmul.f32 4.0, %v472_v46  ;;  %v350_v25 = vmax.f32 %v1640_v12, 0.0  ;;  %v460_v8 = vmul.f32 0.6931472, %v1024_v47 }
 0x16a   :  { %v654_v50 = vsel %vm641_vm9, %v629_v15, 0.0  ;;  %v536_v19 = vsel %vm520_vm14, 1.3862944, %v1638_v11  ;;  %v584_v60 = vmul.f32 %v1322_v1, %v1441_v32  ;;  %v582_v13 = vmul.f32 %v1641_v54, %v1456_v42 }
 0x16b   :  { %v678_v51 = vsel %vm641_vm9, %v637_v27, 0.0  ;;  %655 = vadd.xlane.f32.xlu0 %v654_v50  ;;  %v598_v36 = vmul.f32 4.0, %v470_v31  ;;  %v478_v41 = vadd.f32 %v460_v8, %v350_v25  ;;  %v542_v23 = vsel %vm526_vm11, 1.3862944, %v1638_v11 }
 0x16c   :  { %679 = vadd.xlane.f32.xlu1 %v678_v51  ;;  %v566_v43 = vsel %vm550_vm12, 1.7917595, %v534_v26  ;;  %v608_v29 = vmul.f32 4.0, %v480_v63  ;;  %v544_v1 = vsel %vm528_vm15, 1.3862944, %v1638_v11  ;;  %vm560_vm1 = vcmp.gt.f32.partialorder %v512_v45, 1.5 }
 0x16d   :  { %v614_v0 = vsub.f32 %v582_v13, %v598_v36  ;;  %v616_v32 = vsub.f32 %v584_v60, %v600_v2  ;;  %v592_v42 = vmul.f32 %v1327_v6, %v1453_v38  ;;  %v590_v35 = vmul.f32 %v1642_v9, %v1640_v12 }
 0x16e   :  { %v606_v48 = vmul.f32 4.0, %v478_v41  ;;  %v568_v39 = vsel %vm552_vm0, 1.7917595, %v536_v19  ;;  %v574_v22 = vsel %vm558_vm13, 1.7917595, %v542_v23  ;;  %v706_v18 = vlaneseq }
 0x16f   :  { %v630_v7 = vadd.f32 %v614_v0, %v566_v43  ;;  %v624_v16 = vsub.f32 %v592_v42, %v608_v29  ;;  %v576_v59 = vsel %vm560_vm1, 1.7917595, %v544_v1  ;;  %v632_v62 = vadd.f32 %v616_v32, %v568_v39 }
 0x170   :  { %v622_v3 = vsub.f32 %v590_v35, %v606_v48  ;;  %v707_v34 = vand.u32 127, %v706_v18  ;;  %v1572_v21 = vshrl.u32 %v706_v18, 7  ;;  %vm813_vm10 = vcmask 130112  }
 0x171   :  { %v657_v24 = vsel %vm641_vm9, %v630_v7, 0.0  ;;  %v640_v38 = vadd.f32 %v624_v16, %v576_v59  ;;  %v663_v17 = vsel %vm641_vm9, %v632_v62, 0.0  ;;  %vm816_vm11 = vcmask 122880  }
 0x172   :  { %v638_v52 = vadd.f32 %v622_v3, %v574_v22  ;;  %658 = vadd.xlane.f32.xlu0 %v657_v24  ;;  %v1575_v46 = vsub.s32 %v707_v34, %v1572_v21  ;;  %v808_v22 = vadd.s32 4294967288, %v707_v34 }
 0x173   :  { %v687_v40 = vsel %vm641_vm9, %v640_v38, 0.0 }
 0x174   :  { %v681_v6 = vsel %vm641_vm9, %v638_v52, 0.0  ;;  %vm795_vm9 = vcmask 64512   ;;  %v811_v7 = vsub.s32 %v808_v22, %v1572_v21 }
 0x175   :  { %682 = vadd.xlane.f32.xlu1 %v681_v6 }
 0x176   :  { %664 = vadd.xlane.f32.xlu0 %v663_v17 }
 0x179   :  { %688 = vadd.xlane.f32.xlu1 %v687_v40 }
 0x1e2   :  { %v674_v44 = vpop.xlane.xlu1 %673 }
 0x1e3   :  { %v650_v61 = vpop.xlane.xlu0 %649  ;;  %v751_v47 = vrot.slane %v674_v44, %v1575_v46 }
 0x1e4   :  { %v719_v10 = vrot.slane %v650_v61, %v1575_v46 }
 0x1e6   :  { %v668_v33 = vpop.xlane.xlu1 %667 }
 0x1e7   :  { %v644_v20 = vpop.xlane.xlu0 %643  ;;  %v743_v14 = vrot.slane %v668_v33, %v1575_v46 }
 0x1e8   :  { %v711_v49 = vrot.slane %v644_v20, %v1575_v46 }
 0x1ea   :  { %v677_v56 = vpop.xlane.xlu1 %676 }
 0x1eb   :  { %v653_v45 = vpop.xlane.xlu0 %652  ;;  %v755_v50 = vrot.slane %v677_v56, %v1575_v46 }
 0x1ec   :  { %v723_v55 = vrot.slane %v653_v45, %v1575_v46 }
 0x1ee   :  { %v671_v57 = vpop.xlane.xlu1 %670 }
 0x1ef   :  { %v647_v53 = vpop.xlane.xlu0 %646  ;;  %v747_v4 = vrot.slane %v671_v57, %v1575_v46 }
 0x1f0   :  { %v715_v37 = vrot.slane %v647_v53, %v1575_v46 }
 0x1f1   :  { %v786_v11 = vsel %vm772_vm2, %v747_v4, %v743_v14 }
 0x1f2   :  { %v773_v28 = vsel %vm772_vm2, %v715_v37, %v711_v49  ;;  %v787_v31 = vsel %vm774_vm3, %v751_v47, %v786_v11 }
 0x1f3   :  { %v662_v5 = vpop.xlane.xlu0 %661  ;;  %v686_v58 = vpop.xlane.xlu1 %685  ;;  %v775_v26 = vsel %vm774_vm3, %v719_v10, %v773_v28  ;;  %v788_v13 = vsel %vm776_vm4, %v755_v50, %v787_v31 }
 0x1f4   :  { %v777_v12 = vsel %vm776_vm4, %v723_v55, %v775_v26  ;;  %v735_v54 = vrot.slane %v662_v5, %v1575_v46  ;;  %v767_v0 = vrot.slane %v686_v58, %v1575_v46 }
 0x1f8   :  { %v656_v30 = vpop.xlane.xlu0 %655 }
 0x1f9   :  { %v680_v15 = vpop.xlane.xlu1 %679  ;;  %v727_v63 = vrot.slane %v656_v30, %v1575_v46 }
 0x1fa   :  { %v759_v2 = vrot.slane %v680_v15, %v1575_v46 }
 0x1fb   :  { %v779_v8 = vsel %vm778_vm5, %v727_v63, %v777_v12 }
 0x1fc   :  { %v789_v41 = vsel %vm778_vm5, %v759_v2, %v788_v13 }
 0x1ff   :  { %v659_v27 = vpop.xlane.xlu0 %658 }
 0x200   :  { %v731_v25 = vrot.slane %v659_v27, %v1575_v46 }
 0x202   :  { %v683_v19 = vpop.xlane.xlu1 %682  ;;  %v781_v60 = vsel %vm780_vm6, %v731_v25, %v779_v8 }
 0x203   :  { %v763_v51 = vrot.slane %v683_v19, %v1575_v46  ;;  %v665_v36 = vpop.xlane.xlu0 %664  ;;  %v783_v29 = vsel %vm782_vm7, %v735_v54, %v781_v60 }
 0x204   :  { %v739_v23 = vrot.slane %v665_v36, %v1575_v46 }
 0x205   :  { %v790_v43 = vsel %vm780_vm6, %v763_v51, %v789_v41 }
 0x206   :  { %v689_v1 = vpop.xlane.xlu1 %688  ;;  %v785_v32 = vsel %vm784_vm8, %v739_v23, %v783_v29  ;;  %v791_v35 = vsel %vm782_vm7, %v767_v0, %v790_v43 }
 0x207   :  { %v771_v42 = vrot.slane %v689_v1, %v1575_v46  ;;  %v796_v9 = vsel %vm795_vm9, %v785_v32, 0.0 }
 0x208   :  { %797 = vadd.xlane.f32.xlu0 %v796_v9 }
 0x209   :  { %v792_v48 = vsel %vm784_vm8, %v771_v42, %v791_v35 }
 0x20a   :  { %v799_v39 = vsel %vm795_vm9, %v792_v48, 0.0 }
 0x20b   :  { %800 = vadd.xlane.f32.xlu1 %v799_v39 }
 0x295   :  { %v798_v3 = vpop.xlane.xlu0 %797 }
 0x296   :  { %v807_v16 = vrot.slane %v798_v3, %v1575_v46 }
 0x298   :  { %v801_v24 = vpop.xlane.xlu1 %800 }
 0x299   :  { %v812_v59 = vrot.slane %v801_v24, %v811_v7 }
 0x29b   :  { %v814_v62 = vsel %vm813_vm10, %v812_v59, %v807_v16 }
 0x29c   :  { %817 = vst.msk [vmem:[#allocation10] sm:$0x1] %vm816_vm11, %v814_v62 }
 0x29d   :  { %1124 = shalt.err (!%p1121_p8)
}
 0x29e   :  { %s1125_s15 = scalar_lea.hbm %s1619_s4, 16 }
 0x29f   :  { %p1126_p9 = scmp.ne.s32.totalorder %s1619_s4, %s1125_s15  ;;  %p1129_p10 = scmp.lt.u32.totalorder %s1125_s15, %s1619_s4 }
 0x2a1   :  { %p1131_p11 = pnand %p1129_p10, %p1126_p9 }
 0x2a3   :  { %1134 = shalt.err (!%p1131_p11)
}
 0x2a4   :  { %827 = dma.vmem_to_hbm [thread:$0]  %s825_s28, 16, %s1619_s4, [#allocation4]  }
 0x2a5   :  { %1141 = dma.done.wait [#allocation4], 16  }
 0x2a6   :  { %1142 = vsyncadd [#allocation4], 4294967280 }
 0x2a7   :  { %831 = vsyncpa [#allocation3], 1 }
 0x2a8   :  { %832 = vsyncpa [#allocation6], 1 }
 0x2a9   :  { %833 = vsyncpa [#allocation9], 1 }
 0x2aa   :  { %834 = vsyncpa [#allocation4], 1 }

</bundles_post_ra>
